<compile_context>
chip_gen: v5e
topology: v5e:2x2
jax: 0.10.0
libtpu: 0.0.40
codegen_flags: <defaults>
</compile_context>

<pallas_src>
import functools

import numpy as np
import jax
import jax.numpy as jnp
from jax.experimental import pallas as pl
from jax.experimental.pallas import tpu as pltpu


# db2 (Daubechies-2) decomposition filters (what pywt.Wavelet('db2').dec_lo /
# dec_hi return — hardcoded so no pywt dependency is needed).
_DB2_DEC_LO = np.array(
    [-0.12940952255092145, 0.22414386804185735,
     0.836516303737469, 0.48296291314469025], dtype=np.float64)
_DB2_DEC_HI = np.array(
    [-0.48296291314469025, 0.836516303737469,
     0.22414386804185735, 0.12940952255092145], dtype=np.float64)


def db2_taps():
    """Matches WaveletEmbedding.__init__ for swt=True: h = dec_xx[::-1]."""
    h0 = tuple(float(v) for v in _DB2_DEC_LO[::-1])
    h1 = tuple(float(v) for v in _DB2_DEC_HI[::-1])
    return h0, h1


def make_wavelet_filters(d_channel):
    """Per-channel tiled filters (used only by the FFT reference)."""
    h0 = np.tile(_DB2_DEC_LO[::-1].astype(np.float32)[None, :], (d_channel, 1))
    h1 = np.tile(_DB2_DEC_HI[::-1].astype(np.float32)[None, :], (d_channel, 1))
    return jnp.asarray(h0), jnp.asarray(h1)


# ------------------------------- Pallas kernel --------------------------------
def _swt_kernel(x_ref, o_ref, *, m, L, h0_taps, h1_taps, out_dtype):
    """One row-block per grid step.

    x_ref : (Rt, L)            flattened (batch*channel) rows of the signal
    o_ref : (Rt, (m+1) * L)    level j lives in lanes [j*L, (j+1)*L)
    """
    x = x_ref[...].astype(jnp.float32)
    K = len(h0_taps)

    def shifted_copies(factor):
        # xs[k][r, t] = x[r, (t - k*factor) mod L]
        xs = []
        for k in range(K):
            s = (k * factor) % L
            if s == 0:
                xs.append(x)
            elif L % 128 == 0:
                # XLU rotation (separate VLIW slot, otherwise idle here)
                xs.append(pltpu.roll(x, shift=s, axis=x.ndim - 1))
            else:
                # fallback for non-lane-aligned L: static-slice circular shift
                xs.append(jnp.concatenate([x[:, L - s:], x[:, :L - s]], axis=-1))
        return xs

    def conv(taps, xs):
        # y[r, t] = sum_k taps[k] * x[r, (t - k*factor) mod L]
        acc = taps[0] * xs[0]
        for k in range(1, K):
            acc = acc + taps[k] * xs[k]
        return acc

    # Approximation (slot 0) and deepest detail level (slot 1) share the same
    # upsampling factor 2^(m-1): compute the shifted copies of x once.
    xs_top = shifted_copies(2 ** (m - 1))
    o_ref[:, 0:L] = conv(h0_taps, xs_top).astype(out_dtype)
    o_ref[:, L:2 * L] = conv(h1_taps, xs_top).astype(out_dtype)

    # Remaining detail levels: slot j holds level n = m+1-j, factor 2^(n-1).
    for j in range(2, m + 1):
        xs = shifted_copies(2 ** (m - j))
        o_ref[:, j * L:(j + 1) * L] = conv(h1_taps, xs).astype(out_dtype)


def wavelet_embedding_swt(x, m, *, h0_taps=None, h1_taps=None,
                          row_block=None, out_dtype=None):
    """Pallas wrapper.  x: [B, C, L].  Returns [B, C, m+1, L]."""
    if h0_taps is None or h1_taps is None:
        d0, d1 = db2_taps()
        h0_taps = d0 if h0_taps is None else h0_taps
        h1_taps = d1 if h1_taps is None else h1_taps
    out_dtype = x.dtype if out_dtype is None else jnp.dtype(out_dtype)

    B, C, L = x.shape
    R = B * C
    out_lanes = (m + 1) * L

    # Flatten batch*channel into one row axis: free reshapes on both ends, and
    # the kernel-visible output is a lane-dense [rows, (m+1)*L] slab.
    x2 = x.reshape(R, L)

    if row_block is None:
        itemsize = np.dtype(out_dtype).itemsize
        # target ~2 MiB output block per grid step (well inside v7x's smaller VMEM)
        cap = max(1, (2 << 20) // (out_lanes * itemsize))
        # row_block must be a multiple of 8 (sublane tiling) or the full extent
        divisors = [d for d in range(1, R + 1)
                    if R % d == 0 and (d % 8 == 0 or d == R)]
        under = [d for d in divisors if d <= cap]
        row_block = max(under) if under else R
        # keep >= 2 grid steps when possible so both v7x TensorCores get work
        if row_block == R and R >= 16:
            halves = [d for d in under if d <= (R + 1) // 2]
            if halves:
                row_block = max(halves)

    grid = (R // row_block,)
    kernel = functools.partial(
        _swt_kernel, m=m, L=L,
        h0_taps=tuple(h0_taps), h1_taps=tuple(h1_taps),
        out_dtype=out_dtype)

    out2 = pl.pallas_call(
        kernel,
        out_shape=jax.ShapeDtypeStruct((R, out_lanes), out_dtype),
        grid_spec=pltpu.PrefetchScalarGridSpec(
            num_scalar_prefetch=0,
            grid=grid,
            in_specs=[pl.BlockSpec((row_block, L), lambda r: (r, 0))],
            out_specs=pl.BlockSpec((row_block, out_lanes), lambda r: (r, 0)),
        ),
        compiler_params=pltpu.CompilerParams(
            dimension_semantics=("parallel",)),
    )(x2)

    return out2.reshape(B, C, m + 1, L)


# ------------- pure-JAX reference (mirrors the PyTorch FFT path exactly) -------------
def _upsample_filter(h, factor):
    C, K = h.shape
    up = (K - 1) * factor + 1
    return jnp.zeros((C, up), h.dtype).at[:, ::factor].set(h)


def _fft_convolve_1d(x, filt, L):
    X = jnp.fft.rfft(x, n=L)                 # [B, C, Lf]
    F = jnp.fft.rfft(filt, n=L)[None]        # [1, C, Lf]
    return jnp.fft.irfft(X * F, n=L)


def reference_swt(x, h0, h1, m):
    B, C, L = x.shape
    coeffs = []
    for n in range(1, m + 1):
        factor = 2 ** (n - 1)
        coeffs.append(_fft_convolve_1d(x, _upsample_filter(h1, factor), L))
    coeffs.append(_fft_convolve_1d(x, _upsample_filter(h0, 2 ** (m - 1)), L))
    return jnp.stack(coeffs[::-1], axis=-2)


if __name__ == "__main__":
    key = jax.random.PRNGKey(0)

    # (B, C, L, m): module defaults are d_channel=16, m=2, db2 (K=4)
    configs = [
        (2, 16, 128, 2),   # L multiple of 128 -> pltpu.roll path, grid=(2,)
        (1, 8, 128, 3),    # deeper decomposition, single grid step
    ]
    for (B, C, L, m) in configs:
        key, sub = jax.random.split(key)
        x = jax.random.normal(sub, (B, C, L), dtype=jnp.float32)

        out = jax.block_until_ready(wavelet_embedding_swt(x, m))
        assert out.shape == (B, C, m + 1, L)

        h0c, h1c = make_wavelet_filters(C)
        ref = reference_swt(x, h0c, h1c, m)
        np.testing.assert_allclose(np.asarray(out), np.asarray(ref),
                                   rtol=1e-3, atol=1e-3)

    print("KERNEL_OK")
</pallas_src>

<mosaic_0001>
module attributes {stable_mosaic.version = 11 : i64} {
  func.func @_swt_kernel(%arg0: i32, %arg1: memref<16x128xf32, #tpu.memory_space<vmem>>, %arg2: memref<16x384xf32, #tpu.memory_space<vmem>>) attributes {dimension_semantics = [#tpu.dimension_semantics<parallel>], iteration_bounds = array<i64: 2>, scalar_prefetch = 0 : i64, scratch_operands = 0 : i64, tpu.core_type = #tpu.core_type<tc>, window_params = [{transform_indices = @transform_0, window_bounds = array<i64: 16, 128>}, {transform_indices = @transform_1, window_bounds = array<i64: 16, 384>}]} {
    %c0 = arith.constant 0 : index
    %c0_0 = arith.constant 0 : index
    %0 = vector.load %arg1[%c0, %c0_0] : memref<16x128xf32, #tpu.memory_space<vmem>>, vector<16x128xf32>
    %c2_i32 = arith.constant 2 : i32
    %1 = tpu.dynamic_rotate %0 by %c2_i32 dim 1 : vector<16x128xf32>, i32 -> vector<16x128xf32>
    %c4_i32 = arith.constant 4 : i32
    %2 = tpu.dynamic_rotate %0 by %c4_i32 dim 1 : vector<16x128xf32>, i32 -> vector<16x128xf32>
    %c6_i32 = arith.constant 6 : i32
    %3 = tpu.dynamic_rotate %0 by %c6_i32 dim 1 : vector<16x128xf32>, i32 -> vector<16x128xf32>
    %cst = arith.constant 0.482962906 : f32
    %4 = vector.broadcast %cst : f32 to vector<16x128xf32>
    %5 = arith.mulf %4, %0 : vector<16x128xf32>
    %cst_1 = arith.constant 0.83651632 : f32
    %6 = vector.broadcast %cst_1 : f32 to vector<16x128xf32>
    %7 = arith.mulf %6, %1 : vector<16x128xf32>
    %8 = arith.addf %5, %7 : vector<16x128xf32>
    %cst_2 = arith.constant 0.224143863 : f32
    %9 = vector.broadcast %cst_2 : f32 to vector<16x128xf32>
    %10 = arith.mulf %9, %2 : vector<16x128xf32>
    %11 = arith.addf %8, %10 : vector<16x128xf32>
    %cst_3 = arith.constant -0.129409522 : f32
    %12 = vector.broadcast %cst_3 : f32 to vector<16x128xf32>
    %13 = arith.mulf %12, %3 : vector<16x128xf32>
    %14 = arith.addf %11, %13 : vector<16x128xf32>
    %c0_4 = arith.constant 0 : index
    %c0_5 = arith.constant 0 : index
    %15 = vector.load %arg2[%c0_4, %c0_5] : memref<16x384xf32, #tpu.memory_space<vmem>>, vector<16x128xf32>
    tpu.vector_store %arg2[%c0_4, %c0_5], %14 {strides = array<i32>} : memref<16x384xf32, #tpu.memory_space<vmem>>, vector<16x128xf32>,
    %cst_6 = arith.constant 0.129409522 : f32
    %16 = vector.broadcast %cst_6 : f32 to vector<16x128xf32>
    %17 = arith.mulf %16, %0 : vector<16x128xf32>
    %cst_7 = arith.constant 0.224143863 : f32
    %18 = vector.broadcast %cst_7 : f32 to vector<16x128xf32>
    %19 = arith.mulf %18, %1 : vector<16x128xf32>
    %20 = arith.addf %17, %19 : vector<16x128xf32>
    %cst_8 = arith.constant 0.83651632 : f32
    %21 = vector.broadcast %cst_8 : f32 to vector<16x128xf32>
    %22 = arith.mulf %21, %2 : vector<16x128xf32>
    %23 = arith.addf %20, %22 : vector<16x128xf32>
    %cst_9 = arith.constant -0.482962906 : f32
    %24 = vector.broadcast %cst_9 : f32 to vector<16x128xf32>
    %25 = arith.mulf %24, %3 : vector<16x128xf32>
    %26 = arith.addf %23, %25 : vector<16x128xf32>
    %c0_10 = arith.constant 0 : index
    %c128 = arith.constant 128 : index
    %27 = vector.load %arg2[%c0_10, %c128] : memref<16x384xf32, #tpu.memory_space<vmem>>, vector<16x128xf32>
    tpu.vector_store %arg2[%c0_10, %c128], %26 {strides = array<i32>} : memref<16x384xf32, #tpu.memory_space<vmem>>, vector<16x128xf32>,
    %c1_i32 = arith.constant 1 : i32
    %28 = tpu.dynamic_rotate %0 by %c1_i32 dim 1 : vector<16x128xf32>, i32 -> vector<16x128xf32>
    %c2_i32_11 = arith.constant 2 : i32
    %29 = tpu.dynamic_rotate %0 by %c2_i32_11 dim 1 : vector<16x128xf32>, i32 -> vector<16x128xf32>
    %c3_i32 = arith.constant 3 : i32
    %30 = tpu.dynamic_rotate %0 by %c3_i32 dim 1 : vector<16x128xf32>, i32 -> vector<16x128xf32>
    %cst_12 = arith.constant 0.129409522 : f32
    %31 = vector.broadcast %cst_12 : f32 to vector<16x128xf32>
    %32 = arith.mulf %31, %0 : vector<16x128xf32>
    %cst_13 = arith.constant 0.224143863 : f32
    %33 = vector.broadcast %cst_13 : f32 to vector<16x128xf32>
    %34 = arith.mulf %33, %28 : vector<16x128xf32>
    %35 = arith.addf %32, %34 : vector<16x128xf32>
    %cst_14 = arith.constant 0.83651632 : f32
    %36 = vector.broadcast %cst_14 : f32 to vector<16x128xf32>
    %37 = arith.mulf %36, %29 : vector<16x128xf32>
    %38 = arith.addf %35, %37 : vector<16x128xf32>
    %cst_15 = arith.constant -0.482962906 : f32
    %39 = vector.broadcast %cst_15 : f32 to vector<16x128xf32>
    %40 = arith.mulf %39, %30 : vector<16x128xf32>
    %41 = arith.addf %38, %40 : vector<16x128xf32>
    %c0_16 = arith.constant 0 : index
    %c256 = arith.constant 256 : index
    %42 = vector.load %arg2[%c0_16, %c256] : memref<16x384xf32, #tpu.memory_space<vmem>>, vector<16x128xf32>
    tpu.vector_store %arg2[%c0_16, %c256], %41 {strides = array<i32>} : memref<16x384xf32, #tpu.memory_space<vmem>>, vector<16x128xf32>,
    return
  }
  func.func @transform_0(%arg0: i32) -> (i32, i32) {
    %c0_i32 = arith.constant 0 : i32
    %c0_i32_0 = arith.constant 0 : i32
    return %arg0, %c0_i32 : i32, i32
  }
  func.func @transform_1(%arg0: i32) -> (i32, i32) {
    %c0_i32 = arith.constant 0 : i32
    %c0_i32_0 = arith.constant 0 : i32
    return %arg0, %c0_i32 : i32, i32
  }
}

</mosaic_0001>

<bundles_post_ra>
// kernel: tpu_custom_call.1
= control target key start
LH: loop header
LB: loop body
LE: loop exit
PB: predicated region body
PF: predicated region fallthrough
CT: control target
= control target key end

     0   :  { %6 = vsyncpa [#allocation3], 0  ;;  %s620_s0 = inlined_call_operand.hbm [shape: f32[32,128], index: 0, kind: input, shape index: {}]   ;;  %s621_s1 = inlined_call_operand.hbm [shape: f32[32,384], index: 1, kind: output, shape index: {}]  }
   0x1   :  { %8 = vsyncpa [#allocation3 + $0x1], 0 }
   0x2   :  { %9 = vsyncpa [#allocation4], 0 }
   0x3   :  { %11 = vsyncpa [#allocation4 + $0x1], 0  ;;  %s483_s6 = smov 0   ;;  %s485_s7 = smov 0  }
   0x4   :  { %s487_s8 = smov 0   ;;  %s489_s9 = smov 0  }
   0x5 LB: > { %s504_s10 = sadd.s32 4294967295, %s462_s9   ;;  %s295_s11 = sadd.s32 4294967294, %s462_s9   ;;  %s462_s9 = sphi %s489_s9, %s631_s9   ;;  %s458_s8 = sphi %s487_s8, %s630_s8   ;;  %s454_s7 = sphi %s485_s7, %s629_s7   ;;  %s450_s6 = sphi %s483_s6, %s628_s6  }
   0x6   : > { %s508_s12 = sadd.s32 1, %s462_s9   ;;  %s24_s13 = sadd.s32 1, %s458_s8 }
   0x7   : > { %s21_s14 = ssub.s32 %s462_s9, %s508_s12  ;;  %p31_p0 = scmp.ne.s32.totalorder %s458_s8, %s454_s7 }
   0x8   : > { %p22_p1 = scmp.eq.s32.totalorder %s21_s14, 0  ;;  %p32_p2 = scmp.eq.s32.totalorder %s462_s9, 0 }
   0x9   : > { %p37_p3 = scmp.ne.s32.totalorder %s454_s7, %s450_s6  ;;  %p38_p4 = scmp.eq.s32.totalorder %s504_s10, 0 }
   0xa   : > { %s520_s15 = scalar_select %p22_p1, %s458_s8, %s24_s13  }
   0xb   : > { %p522_p5 = por %p32_p2, %p31_p0  ;;  %p526_p6 = por %p38_p4, %p37_p3 }
   0xc   : > { %p61_p7 = scmp.eq.s32.totalorder %s504_s10, 1  ;;  %p67_p8 = scmp.eq.s32.totalorder %s295_s11, 1 }
   0xd   : > { %p323_p10 = scmp.lt.s32.totalorder %s462_s9, 2  ;;  %s87_s20 = sand.u32 1, %s458_s8  }
   0xe   : > { %p533_p11 = por %p61_p7, %p31_p0  ;;  %p537_p12 = por %p67_p8, %p37_p3 }
   0xf   : > { %s308_s21 = sshll.u32 %s462_s9, 4  ;;  %s298_s22 = sshll.u32 %s87_s20, 4 }
  0x10   : > { %s96_s25 = scalar_lea.hbm %s620_s0, %s308_s21  ;;  %s91_s27 = scalar_lea.vmem [#allocation2], %s298_s22 }
  0x11   : > { %s97_s26 = sshll.u32 %s96_s25, 4  ;;  %s99_s28 = sshll.u32 %s91_s27, 4  ;;  %s98_s26 = int_to_ptr.hbm [resolvable:$true] %s97_s26  ;;  %s100_s28 = int_to_ptr.vmem [resolvable:$true] %s99_s28 }
  0x12   : > { %p548_p13 = pnand %p323_p10, %p522_p5  ;;  %p301_p0 = scmp.ge.s32.totalorder %s462_s9, 1 }
  0x13   : > { %p107_p1 = scmp.lt.s32.totalorder %s462_s9, 3  ;;  %s88_s30 = scalar_lea.sflag [#allocation3], %s87_s20 }
  0x14   : > { %s366_s2 = sshra.s32 %s98_s26, 4  ;;  %p370_p3 = pneg %p548_p13  ;;  %s367_s2 = int_to_ptr.hbm [resolvable:$true] %s366_s2 }
  0x15   : > { %s368_s3 = scalar_lea.hbm %s367_s2, 16  ;;  %s373_s11 = scalar_lea.hbm %s620_s0, 32 }
  0x16   : > { %p369_p2 = scmp.ne.s32.totalorder %s367_s2, %s368_s3  ;;  %p374_p5 = scmp.lt.s32.totalorder %s367_s2, %s620_s0 }
  0x17   : > { %p375_p8 = scmp.lt.s32.totalorder %s373_s11, %s368_s3 }
  0x18   : > { %p371_p4 = pnand %p370_p3, %p369_p2 }
  0x19   : > { %p376_p10 = por %p375_p8, %p374_p5 }
  0x1a   : > { %p372_p7 = pneg %p371_p4 }
  0x1c   : > { %p377_p9 = pnand %p376_p10, %p372_p7 }
  0x1e   : > { %380 = shalt.err (!%p377_p9)
}
  0x1f   : > { %s464_s16 = smov 128   ;;  %s465_s20 = smov 8  }
  0x20   : > { %318 = dma.hbm_to_vmem [thread:$0]  (!%p548_p13), %s98_s26, 256, %s100_s28, %s88_s30, %s464_s16, %s464_s16, %s465_s20  }
  0x21   : > { %p108_p2 = pnand %p301_p0, %p107_p1 }
  0x22   : > { %s569_s21 = sand.u32 (!%p108_p2), 1, %s454_s7  }
  0x23   : > { %111 = sbr.rel (%p108_p2) target bundleno = 189 (0xbd), region = 24  ;;  %s302_s22 = sshll.u32 (!%p108_p2), %s569_s21, 4 }
  0x24   : > { %s114_s23 = scalar_lea.sflag (!%p108_p2), [#allocation3], %s569_s21  ;;  %s117_s24 = scalar_lea.vmem (!%p108_p2), [#allocation2], %s302_s22 }
  0x28   : > { %441 = dma.done.wait (%p526_p6), %s114_s23, 256  }
  0x29   : > { %443 = vsyncadd (%p526_p6), %s114_s23, 4294967040  ;;  %v139_v0 = vld [vmem:[%s117_s24] sm:$0xff]  ;;  %s466_s25 = smov 1   ;;  %s467_s26 = smov 2   ;;  %v140_v1 = vld [vmem:[%s117_s24 + $0x8] sm:$0xff] }
  0x2a   : > { %185 = vrot.lane.b32.xlu1 %v139_v0, %s466_s25  ;;  %141 = vrot.lane.b32.xlu0 %v139_v0, %s467_s26  ;;  %s468_s27 = smov 4   ;;  %s469_s28 = smov 6   ;;  %v169_v4 = vmul.f32 0.12940952, %v139_v0  ;;  %v153_v14 = vmul.f32 0.4829629, %v139_v0 }
  0x2b   : > { %145 = vrot.lane.b32.xlu2 %v139_v0, %s468_s27  ;;  %s470_s29 = smov 3   ;;  %s309_s17 = smul.u32 48, %s569_s21  ;;  %v154_v16 = vmul.f32 0.4829629, %v140_v1  ;;  %v170_v18 = vmul.f32 0.12940952, %v140_v1 }
  0x2c   : > { %s310_s2 = smul.u32 48, %s504_s10  ;;  %s206_s13 = scalar_lea.sflag [#allocation4], %s569_s21 }
  0x2d   : > { %s578_s30 = scalar_lea.vmem [#allocation5], %s309_s17  ;;  %s416_s23 = scalar_lea.hbm %s621_s1, 96 }
  0x2e   : > { %s218_s10 = scalar_lea.hbm %s621_s1, %s310_s2  ;;  %s219_s5 = sshll.u32 %s578_s30, 4  ;;  %s220_s5 = int_to_ptr.vmem [resolvable:$true] %s219_s5 }
  0x2f   : > { %s221_s11 = sshll.u32 %s218_s10, 4  ;;  %s222_s11 = int_to_ptr.hbm [resolvable:$true] %s221_s11 }
  0x30   : > { %s410_s14 = sshra.s32 %s222_s11, 4  ;;  %s411_s14 = int_to_ptr.hbm [resolvable:$true] %s410_s14 }
  0x31   : > { %s412_s16 = scalar_lea.hbm %s411_s14, 48  ;;  %p417_p0 = scmp.lt.s32.totalorder %s411_s14, %s621_s1 }
  0x32   : > { %187 = vrot.lane.b32.xlu1 %v140_v1, %s466_s25  ;;  %143 = vrot.lane.b32.xlu0 %v140_v1, %s467_s26  ;;  %p413_p6 = scmp.ne.s32.totalorder %s411_s14, %s412_s16  ;;  %p418_p1 = scmp.lt.s32.totalorder %s416_s23, %s412_s16 }
  0x33   : > { %147 = vrot.lane.b32.xlu2 %v140_v1, %s468_s27 }
  0x34   : > { %p414_p9 = pnand %p413_p6, %p533_p11  ;;  %p419_p3 = por %p418_p1, %p417_p0 }
  0x36   : > { %p415_p13 = pneg %p414_p9 }
  0x38   : > { %p420_p4 = pnand %p419_p3, %p415_p13 }
  0x3a   : > { %151 = vrot.lane.b32.xlu1 %v140_v1, %s469_s28  ;;  %149 = vrot.lane.b32.xlu0 %v139_v0, %s469_s28 }
  0x3b   : > { %189 = vrot.lane.b32.xlu2 %v139_v0, %s470_s29 }
  0x42   : > { %191 = vrot.lane.b32.xlu0 %v140_v1, %s470_s29 }
  0x85   : > { %v146_v2 = vpop.permute.xlu2 %145 }
  0x86   : > { %v159_v22 = vmul.f32 0.22414386, %v146_v2  ;;  %v175_v28 = vmul.f32 0.8365163, %v146_v2 }
  0x8d   : > { %v148_v3 = vpop.permute.xlu2 %147 }
  0x8e   : > { %v160_v23 = vmul.f32 0.22414386, %v148_v3  ;;  %v176_v26 = vmul.f32 0.8365163, %v148_v3 }
  0x95   : > { %v190_v5 = vpop.permute.xlu2 %189 }
  0x96   : > { %v199_v11 = vmul.f32 -0.4829629, %v190_v5 }
  0x9c   : > { %v186_v6 = vpop.permute.xlu1 %185  ;;  %v142_v7 = vpop.permute.xlu0 %141 }
  0x9d   : > { %v193_v8 = vmul.f32 0.22414386, %v186_v6  ;;  %v155_v10 = vmul.f32 0.8365163, %v142_v7  ;;  %v171_v20 = vmul.f32 0.22414386, %v142_v7 }
  0x9f   : > { %v195_v9 = vadd.f32 %v193_v8, %v169_v4  ;;  %v157_v24 = vadd.f32 %v155_v10, %v153_v14  ;;  %v173_v29 = vadd.f32 %v171_v20, %v169_v4 }
  0xa1   : > { %v197_v12 = vadd.f32 %v195_v9, %v155_v10  ;;  %v161_v34 = vadd.f32 %v159_v22, %v157_v24  ;;  %v177_v39 = vadd.f32 %v175_v28, %v173_v29 }
  0xa3   : > { %v201_v13 = vadd.f32 %v199_v11, %v197_v12 }
  0xa4   : > { %v188_v15 = vpop.permute.xlu1 %187  ;;  %v144_v17 = vpop.permute.xlu0 %143 }
  0xa5   : > { %203 = vst [vmem:[%s578_s30 + $0x10] sm:$0xff] %v201_v13  ;;  %v156_v19 = vmul.f32 0.8365163, %v144_v17  ;;  %v172_v21 = vmul.f32 0.22414386, %v144_v17 }
  0xa6   : > { %v194_v30 = vmul.f32 0.22414386, %v188_v15 }
  0xa7   : > { %v158_v25 = vadd.f32 %v156_v19, %v154_v16  ;;  %v174_v27 = vadd.f32 %v172_v21, %v170_v18 }
  0xa8   : > { %v196_v45 = vadd.f32 %v194_v30, %v170_v18 }
  0xa9   : > { %v162_v32 = vadd.f32 %v160_v23, %v158_v25  ;;  %v178_v36 = vadd.f32 %v176_v26, %v174_v27 }
  0xaa   : > { %v198_v47 = vadd.f32 %v196_v45, %v156_v19 }
  0xac   : > { %v152_v31 = vpop.permute.xlu1 %151  ;;  %v150_v33 = vpop.permute.xlu0 %149 }
  0xad   : > { %v164_v35 = vmul.f32 -0.12940952, %v152_v31  ;;  %v180_v37 = vmul.f32 -0.4829629, %v152_v31  ;;  %v163_v38 = vmul.f32 -0.12940952, %v150_v33 }
  0xae   : > { %v179_v40 = vmul.f32 -0.4829629, %v150_v33 }
  0xaf   : > { %v166_v41 = vadd.f32 %v164_v35, %v162_v32  ;;  %v182_v42 = vadd.f32 %v180_v37, %v178_v36  ;;  %v165_v43 = vadd.f32 %v163_v38, %v161_v34 }
  0xb0   : > { %v181_v44 = vadd.f32 %v179_v40, %v177_v39 }
  0xb1   : > { %168 = vst [vmem:[%s578_s30 + $0x18] sm:$0xff] %v166_v41 }
  0xb2   : > { %184 = vst [vmem:[%s578_s30 + $0x20] sm:$0xff] %v182_v42 }
  0xb3   : > { %167 = vst [vmem:[%s578_s30] sm:$0xff] %v165_v43 }
  0xb4   : > { %183 = vst [vmem:[%s578_s30 + $0x8] sm:$0xff] %v181_v44  ;;  %v192_v46 = vpop.permute.xlu0 %191 }
  0xb5   : > { %v200_v48 = vmul.f32 -0.4829629, %v192_v46 }
  0xb7   : > { %v202_v49 = vadd.f32 %v200_v48, %v198_v47 }
  0xb9   : > { %204 = vst [vmem:[%s578_s30 + $0x28] sm:$0xff] %v202_v49 }
  0xba   : > { %423 = shalt.err (!%p420_p4)
}
  0xbb   : > { %s471_s21 = smov 384   ;;  %s472_s26 = smov 24  }
  0xbc   : > { %313 = dma.vmem_to_hbm [thread:$0]  (%p533_p11), %s220_s5, 768, %s222_s11, %s206_s13, %s471_s21, %s471_s21, %s472_s26  }
  0xbd PF: > { %s236_s27 = sand.u32 1, %s450_s6   ;;  %p627_p7 = scmp.ge.s32.totalorder %s462_s9, 2 }
  0xbe   : > { %s237_s28 = scalar_lea.sflag [#allocation4], %s236_s27 }
  0xbf   : > { %p320_p5 = pnand %p627_p7, %p537_p12 }
  0xc1   : > { %p321_p8 = pneg %p320_p5 }
  0xc3   : > { %445 = dma.done.wait (%p321_p8), %s237_s28, 768  }
  0xc4   : > { %447 = vsyncadd (%p321_p8), %s237_s28, 4294966528  ;;  %p14_p10 = scmp.ge.s32.totalorder %s508_s12, 4   ;;  %s628_s6 = smov %s454_s7 }
  0xc5   : > { %s629_s7 = smov %s458_s8  ;;  %s630_s8 = smov %s520_s15 }
  0xc6   : > { %s631_s9 = smov %s508_s12  ;;  %16 = sbr.rel (!%p14_p10) target bundleno = 5 (0x5), region = 69 }
  0xcb   :  { %243 = vsyncpa [#allocation3], 1 }
  0xcc   :  { %245 = vsyncpa [#allocation3 + $0x1], 1 }
  0xcd   :  { %246 = vsyncpa [#allocation4], 1 }
  0xce   :  { %248 = vsyncpa [#allocation4 + $0x1], 1 }

</bundles_post_ra>
